<compile_context>
chip_gen: v7x
topology: tpu7x:2x2x1
jax: 0.10.0
libtpu: 0.0.40
codegen_flags: <defaults>
</compile_context>

<pallas_src>
import functools

import jax
import jax.numpy as jnp
from jax.experimental import pallas as pl
from jax.experimental.pallas import tpu as pltpu


# -----------------------------------------------------------------------------
# pltpu.roll rotation-direction self-check (one trivial kernel, cached).
# Every im2col tap / pool shift below is a lane rotate, so the sign of the
# rotate amount is confirmed on the hardware once instead of trusted.
# -----------------------------------------------------------------------------
@functools.lru_cache(maxsize=None)
def _roll_matches_numpy() -> bool:
    def probe(x_ref, o_ref):
        o_ref[...] = pltpu.roll(x_ref[...], 1, 1)

    x = jnp.broadcast_to(jnp.arange(128, dtype=jnp.float32), (8, 128))
    y = pl.pallas_call(
        probe, out_shape=jax.ShapeDtypeStruct((8, 128), jnp.float32))(x)
    first = float(y[0, 0])
    if first == 127.0:            # roll(v, k)[j] == v[j - k]  (numpy convention)
        return True
    if first == 1.0:              # roll(v, k)[j] == v[j + k]
        return False
    raise RuntimeError(f"unexpected pltpu.roll behaviour (probe -> {first})")


# -----------------------------------------------------------------------------
# Fused whole-network kernel (one image per grid step)
# -----------------------------------------------------------------------------
def _make_tinyvgg_kernel(H, W, out_f, out_pad):
    HW2 = (H // 2) * W                                   # compacted block-2 frame
    taps1 = tuple(dy * W + dx for dy in range(3) for dx in range(3))
    taps2 = tuple(dy * W + 2 * dx for dy in range(3) for dx in range(3))
    pool1 = (1, W, W + 1)                                # offsets beyond 0
    pool2 = (2, W, W + 2)
    np_roll = _roll_matches_numpy()

    def kernel(x_ref, w1_ref, b1_ref, w2_ref, b2_ref, w3_ref, b3_ref,
               w4_ref, b4_ref, wc_ref, bl_ref, o_ref, cmp_ref):

        def lshift(v, s):
            # lshift(v, s)[:, j] == v[:, (j + s) % n]  (XLU lane rotate).  The
            # wrapped tail is finite and only lands on positions outside the
            # valid output window (see header comment).
            if s == 0:
                return v
            n = v.shape[1]
            amt = (n - s) % n if np_roll else s % n
            return pltpu.roll(v, amt, 1)

        def conv_relu(act, w_ref, b_ref, taps):
            # one MXU matmul per conv: (Cout, 9*Cin) @ (9*Cin, frame)
            patches = jnp.concatenate([lshift(act, s) for s in taps], axis=0)
            acc = jnp.dot(w_ref[...], patches,
                          preferred_element_type=jnp.float32)
            return jnp.maximum(acc + b_ref[...], 0.0)    # bias folded into ReLU

        def maxpool2x2(act, offs):
            # max of 4 rolled copies; result stays in place on a strided
            # sub-grid of the frame (no gather here).
            m = act
            for s in offs:
                m = jnp.maximum(m, lshift(act, s))
            return m

        # ---- block 1: full 64x64 frame ------------------------------------
        a = x_ref[0]                                     # (Cpad, H*W)
        a = conv_relu(a, w1_ref, b1_ref, taps1)
        a = conv_relu(a, w2_ref, b2_ref, taps1)
        a = maxpool2x2(a, pool1)                         # stride-2 grid, in place

        # ---- compact even rows -> dense (hidden, 32*64) frame ---------------
        # every even row starts at a lane offset that is a multiple of 128, so
        # this is 32 static (hidden, 64) slice-stores into a VMEM scratch.
        for r in range(H // 2):
            cmp_ref[:, r * W:(r + 1) * W] = a[:, (2 * r) * W:(2 * r) * W + W]
        a = cmp_ref[...]                                 # (hidden, HW2)

        # ---- block 2: half-sized frame --------------------------------------
        a = conv_relu(a, w3_ref, b3_ref, taps2)
        a = conv_relu(a, w4_ref, b4_ref, taps2)
        a = maxpool2x2(a, pool2)                         # features: 2-row/4-col stride

        # ---- classifier: all outputs at once, one lane-dense store ----------
        # wcls was scattered onto the compacted feature grid in the wrapper
        # (zeros elsewhere), so a masked full-frame reduction == nn.Linear.
        prod = wc_ref[...] * a[None, :, :]               # (out_f, hidden, HW2)
        per_oc = jnp.sum(prod, axis=2)                   # (out_f, hidden)
        per_o = jnp.sum(per_oc, axis=1, keepdims=True)   # (out_f, 1)
        row_id = jax.lax.broadcasted_iota(jnp.int32, (out_f, out_pad), 0)
        col_id = jax.lax.broadcasted_iota(jnp.int32, (out_f, out_pad), 1)
        logits = jnp.sum(jnp.where(row_id == col_id, per_o, 0.0),
                         axis=0, keepdims=True)          # (1, out_pad)
        o_ref[0] = logits + bl_ref[...]

    return kernel


# -----------------------------------------------------------------------------
# Parameter preparation (PyTorch conventions in, kernel layouts out).
# -----------------------------------------------------------------------------
def _prep_params(p, cpad, hidden, out_f, out_pad, H, W):
    def conv_mat(w_oihw, cp):
        o, c, kh, kw = w_oihw.shape
        wt = jnp.transpose(w_oihw, (2, 3, 1, 0))          # (kh, kw, c, o)
        if cp > c:
            wt = jnp.pad(wt, ((0, 0), (0, 0), (0, cp - c), (0, 0)))
        return wt.reshape(kh * kw * cp, o).T              # (o, 9*cp)

    w1m = conv_mat(p["w1"], cpad)
    w2m = conv_mat(p["w2"], hidden)
    w3m = conv_mat(p["w3"], hidden)
    w4m = conv_mat(p["w4"], hidden)
    b1 = p["b1"].reshape(hidden, 1)
    b2 = p["b2"].reshape(hidden, 1)
    b3 = p["b3"].reshape(hidden, 1)
    b4 = p["b4"].reshape(hidden, 1)

    # Linear weight (out, hidden*13*13), flatten order (c, y, x) like
    # nn.Flatten on NCHW.  Feature (c, Y2, X2) lives at row 2*Y2, column 4*X2
    # of the compacted (H//2, W) frame after pool1-compaction + in-place pool2.
    wl4 = p["wl"].reshape(out_f, hidden, 13, 13)
    wcls = jnp.zeros((out_f, hidden, H // 2, W), jnp.float32)
    wcls = wcls.at[:, :, 0:2 * 13:2, 0:4 * 13:4].set(wl4)
    wcls = wcls.reshape(out_f, hidden, (H // 2) * W)
    bl = jnp.zeros((1, out_pad), jnp.float32).at[0, :out_f].set(p["bl"])
    return w1m, b1, w2m, b2, w3m, b3, w4m, b4, wcls, bl


# -----------------------------------------------------------------------------
# Forward pass
# -----------------------------------------------------------------------------
def tiny_model_forward(x_nchw, params):
    B, cin, H, W = x_nchw.shape
    hidden = params["w1"].shape[0]
    out_f = params["wl"].shape[0]
    HW = H * W
    HW2 = (H // 2) * W
    out_pad = ((out_f + 127) // 128) * 128               # lane-dense output row

    fh = ((H - 4) // 2 - 4) // 2
    fw = ((W - 4) // 2 - 4) // 2
    assert (H - 4) % 2 == 0 and (W - 4) % 2 == 0 and fh == 13 and fw == 13, \
        "TinyVGG classifier (hidden*13*13) requires 64x64 input"

    cpad = ((cin + 7) // 8) * 8                          # pad input C to sublanes
    (w1m, b1, w2m, b2, w3m, b3, w4m, b4, wcls, bl) = _prep_params(
        params, cpad, hidden, out_f, out_pad, H, W)

    # NCHW is already channel-major per image: pad C, flatten spatial to lanes.
    if cpad != cin:
        x_nchw = jnp.pad(x_nchw, ((0, 0), (0, cpad - cin), (0, 0), (0, 0)))
    x_flat = x_nchw.reshape(B, cpad, HW)

    kernel = _make_tinyvgg_kernel(H, W, out_f, out_pad)
    const = lambda b: (0, 0)

    # NOTE: weights keep default (double) buffering -- at grid=(B,) the extra
    # buffer is a few hundred KiB of VMEM and pl.Buffered(1) buys nothing here.
    y = pl.pallas_call(
        kernel,
        out_shape=jax.ShapeDtypeStruct((B, 1, out_pad), jnp.float32),
        grid=(B,),
        in_specs=[
            pl.BlockSpec((1, cpad, HW), lambda b: (b, 0, 0)),
            pl.BlockSpec((hidden, 9 * cpad), const),
            pl.BlockSpec((hidden, 1), const),
            pl.BlockSpec((hidden, 9 * hidden), const),
            pl.BlockSpec((hidden, 1), const),
            pl.BlockSpec((hidden, 9 * hidden), const),
            pl.BlockSpec((hidden, 1), const),
            pl.BlockSpec((hidden, 9 * hidden), const),
            pl.BlockSpec((hidden, 1), const),
            pl.BlockSpec((out_f, hidden, HW2), lambda b: (0, 0, 0)),
            pl.BlockSpec((1, out_pad), const),
        ],
        out_specs=pl.BlockSpec((1, 1, out_pad), lambda b: (b, 0, 0)),
        scratch_shapes=[pltpu.VMEM((hidden, HW2), jnp.float32)],
        compiler_params=pltpu.CompilerParams(
            dimension_semantics=("parallel",)),
    )(x_flat, w1m, b1, w2m, b2, w3m, b3, w4m, b4, wcls, bl)
    return y[:, 0, :out_f]


# -----------------------------------------------------------------------------
# Parameters (PyTorch conventions) and pure-JAX reference
# -----------------------------------------------------------------------------
def init_params(key, input_shape, hidden_units, output_shape):
    ks = jax.random.split(key, 10)
    n = jax.random.normal

    def conv_w(k, cout, cin):
        return n(k, (cout, cin, 3, 3), jnp.float32) * (2.0 / (cin * 9)) ** 0.5

    feat = hidden_units * 13 * 13
    return {
        "w1": conv_w(ks[0], hidden_units, input_shape),
        "b1": 0.01 * n(ks[1], (hidden_units,), jnp.float32),
        "w2": conv_w(ks[2], hidden_units, hidden_units),
        "b2": 0.01 * n(ks[3], (hidden_units,), jnp.float32),
        "w3": conv_w(ks[4], hidden_units, hidden_units),
        "b3": 0.01 * n(ks[5], (hidden_units,), jnp.float32),
        "w4": conv_w(ks[6], hidden_units, hidden_units),
        "b4": 0.01 * n(ks[7], (hidden_units,), jnp.float32),
        # PyTorch Linear convention: (out_features, in_features)
        "wl": n(ks[8], (output_shape, feat), jnp.float32) * (1.0 / feat) ** 0.5,
        "bl": 0.01 * n(ks[9], (output_shape,), jnp.float32),
    }


def ref_forward(x_nchw, p):
    dn = ("NCHW", "OIHW", "NCHW")
    prec = jax.lax.Precision.HIGHEST

    def conv(x, w, b):
        y = jax.lax.conv_general_dilated(x, w, (1, 1), "VALID",
                                         dimension_numbers=dn, precision=prec)
        return jnp.maximum(y + b.reshape(1, -1, 1, 1), 0.0)

    def pool(x):
        return jax.lax.reduce_window(x, -jnp.inf, jax.lax.max,
                                     (1, 1, 2, 2), (1, 1, 2, 2), "VALID")

    x = pool(conv(conv(x_nchw, p["w1"], p["b1"]), p["w2"], p["b2"]))
    x = pool(conv(conv(x, p["w3"], p["b3"]), p["w4"], p["b4"]))
    x = x.reshape(x.shape[0], -1)
    return jnp.dot(x, p["wl"].T, precision=prec) + p["bl"][None, :]


if __name__ == "__main__":
    # Spatial size is forced to 64x64 by the classifier's hidden*13*13 features.
    B, C_IN, H, W = 2, 3, 64, 64
    HIDDEN, OUT = 8, 4

    _roll_matches_numpy()                   # warm the roll-direction probe

    key = jax.random.PRNGKey(0)
    kx, kp = jax.random.split(key)
    x_nchw = jax.random.normal(kx, (B, C_IN, H, W), jnp.float32)
    params = init_params(kp, C_IN, HIDDEN, OUT)

    fwd = jax.jit(tiny_model_forward)
    y = jax.block_until_ready(fwd(x_nchw, params))
    assert y.shape == (B, OUT), y.shape

    y_ref = jax.block_until_ready(ref_forward(x_nchw, params))
    assert jnp.all(jnp.isfinite(y))
    err = float(jnp.max(jnp.abs(y - y_ref)))
    # all-f32 path: tightened from 2e-2 so tap/layout regressions are caught.
    assert jnp.allclose(y, y_ref, rtol=2e-4, atol=2e-4), \
        f"max abs diff {err}"

    print("KERNEL_OK")
</pallas_src>

<mosaic_0001>
module attributes {stable_mosaic.version = 11 : i64} {
  func.func @probe(%arg0: memref<8x128xf32, #tpu.memory_space<vmem>>, %arg1: memref<8x128xf32, #tpu.memory_space<vmem>>) attributes {dimension_semantics = [], scalar_prefetch = 0 : i64, scratch_operands = 0 : i64, tpu.core_type = #tpu.core_type<tc>} {
    %c0 = arith.constant 0 : index
    %c0_0 = arith.constant 0 : index
    %0 = vector.load %arg0[%c0, %c0_0] : memref<8x128xf32, #tpu.memory_space<vmem>>, vector<8x128xf32>
    %c1_i32 = arith.constant 1 : i32
    %1 = tpu.dynamic_rotate %0 by %c1_i32 dim 1 : vector<8x128xf32>, i32 -> vector<8x128xf32>
    %c0_1 = arith.constant 0 : index
    %c0_2 = arith.constant 0 : index
    %2 = vector.load %arg1[%c0_1, %c0_2] : memref<8x128xf32, #tpu.memory_space<vmem>>, vector<8x128xf32>
    tpu.vector_store %arg1[%c0_1, %c0_2], %1 {strides = array<i32>} : memref<8x128xf32, #tpu.memory_space<vmem>>, vector<8x128xf32>,
    return
  }
}

</mosaic_0001>

<bundles_post_ra>
// kernel: tpu_custom_call.1
= control target key start
LH: loop header
LB: loop body
LE: loop exit
PB: predicated region body
PF: predicated region fallthrough
CT: control target
= control target key end

     0   :  { %6 = vsyncpa [#allocation3], 0  ;;  %s128_s0 = inlined_call_operand.hbm [shape: f32[8,128], index: 0, kind: input, shape index: {}]   ;;  %s129_s1 = inlined_call_operand.hbm [shape: f32[8,128], index: 1, kind: output, shape index: {}]  }
   0x1   :  { %7 = vsyncpa [#allocation4], 0  ;;  %s91_s6 = smov [#allocation2]   ;;  %s43_s10 = scalar_lea.hbm %s128_s0, 128 }
   0x2   :  { %s14_s7 = sshll.u32 %s91_s6, 4  ;;  %p44_p0 = scmp.ne.s32.totalorder %s128_s0, %s43_s10  ;;  %s15_s7 = int_to_ptr.vmem [resolvable:$true] %s14_s7 }
   0x3   :  { %p47_p1 = scmp.lt.u32.totalorder %s43_s10, %s128_s0 }
   0x5   :  { %p49_p2 = pnand %p47_p1, %p44_p0 }
   0x7   :  { %52 = shalt.err (!%p49_p2)
}
   0x8   :  { %s53_s15 = scalar_lea.vmem %s15_s7, 128  ;;  %p58_p4 = scmp.lt.s32.totalorder %s15_s7, %s15_s7 }
   0x9   :  { %p54_p3 = scmp.ne.s32.totalorder %s15_s7, %s53_s15  ;;  %p59_p5 = scmp.lt.s32.totalorder %s53_s15, %s53_s15 }
   0xb   :  { %p60_p6 = por %p59_p5, %p58_p4 }
   0xd   :  { %p61_p7 = pnand %p60_p6, %p54_p3 }
   0xf   :  { %64 = shalt.err (!%p61_p7)
}
  0x10   :  { %17 = dma.hbm_to_vmem [thread:$0]  %s128_s0, 128, %s15_s7, [#allocation3]  }
  0x11   :  { %87 = dma.done.wait [#allocation3], 128  }
  0x12   :  { %88 = vsyncadd [#allocation3], 4294967168  ;;  %v21_v0 = vld [vmem:[#allocation2] sm:$0xff]  ;;  %s92_s18 = smov 1   ;;  %s93_s19 = smov [#allocation5]  }
  0x13   :  { %22 = vrot.lane.b32.xlu0 %v21_v0, %s92_s18  ;;  %s31_s20 = sshll.u32 %s93_s19, 4  ;;  %s32_s20 = int_to_ptr.vmem [resolvable:$true] %s31_s20 }
  0x14   :  { %s65_s21 = scalar_lea.vmem %s32_s20, 128  ;;  %p70_p9 = scmp.lt.s32.totalorder %s32_s20, %s32_s20 }
  0x15   :  { %p66_p8 = scmp.ne.s32.totalorder %s32_s20, %s65_s21  ;;  %p71_p10 = scmp.lt.s32.totalorder %s65_s21, %s65_s21 }
  0x17   :  { %p72_p11 = por %p71_p10, %p70_p9 }
  0x19   :  { %p73_p12 = pnand %p72_p11, %p66_p8 }
  0x85   :  { %v23_v1 = vpop.permute.xlu0 %22 }
  0x86   :  { %24 = vst [vmem:[#allocation5] sm:$0xff] %v23_v1 }
  0x87   :  { %76 = shalt.err (!%p73_p12)
}
  0x88   :  { %s77_s0 = scalar_lea.hbm %s129_s1, 128 }
  0x89   :  { %p78_p13 = scmp.ne.s32.totalorder %s129_s1, %s77_s0  ;;  %p81_p0 = scmp.lt.u32.totalorder %s77_s0, %s129_s1 }
  0x8b   :  { %p83_p1 = pnand %p81_p0, %p78_p13 }
  0x8d   :  { %86 = shalt.err (!%p83_p1)
}
  0x8e   :  { %34 = dma.vmem_to_hbm [thread:$0]  %s32_s20, 128, %s129_s1, [#allocation4]  }
  0x8f   :  { %89 = dma.done.wait [#allocation4], 128  }
  0x90   :  { %90 = vsyncadd [#allocation4], 4294967168 }
  0x91   :  { %38 = vsyncpa [#allocation3], 1 }
  0x92   :  { %39 = vsyncpa [#allocation4], 1 }

</bundles_post_ra>
